<compile_context>
chip_gen: v7x
topology: tpu7x:2x2x1
jax: 0.10.0
libtpu: 0.0.40
codegen_flags: <defaults>
</compile_context>

<pallas_src>
import functools

import jax
import jax.numpy as jnp
from jax import lax
from jax.experimental import pallas as pl
from jax.experimental.pallas import tpu as pltpu

LANES = 128
SUBLANES = 8
ROW_ALIGN = 32                 # keeps (rows, lane) blocks legal for f32/bf16/int8
TARGET_BLOCK_BYTES = 1 << 20   # ~1 MiB of VMEM per input block (2048 x 128 f32)


def _round_up(x, m):
    return (x + m - 1) // m * m


def _num_tensorcores():
    """v7x has 2 TensorCores per chip; v5e/v6e have 1."""
    try:
        kind = jax.devices()[0].device_kind.lower()
        if "v7" in kind:
            return 2
    except Exception:
        pass
    return 1


def _masked_mse_kernel(pred_ref, tgt_ref, mask_ref, sq_out_ref, m_out_ref, *,
                       rows, tile_rows, acc_rows, lane_w, tiles_per_split,
                       needs_row_mask):
    s = pl.program_id(0)   # TensorCore split (size 1 on single-TC chips)
    j = pl.program_id(1)   # row-tile index within this split ("arbitrary")

    # Outputs are VMEM-resident across the inner axis; zero them once per split.
    @pl.when(j == 0)
    def _():
        sq_out_ref[...] = jnp.zeros_like(sq_out_ref)
        m_out_ref[...] = jnp.zeros_like(m_out_ref)

    block_base = (s * tiles_per_split + j) * tile_rows   # logical first row

    if needs_row_mask:
        row_iota = lax.broadcasted_iota(jnp.int32, (acc_rows, lane_w), 0)

    def chunk_sums(chunk_base, p, t, m):
        p = p.astype(jnp.float32)
        t = t.astype(jnp.float32)
        m = m.astype(jnp.float32)
        d = p - t
        w = m * d * d
        if needs_row_mask:
            # Ragged tail (and fully out-of-range blocks on the last core):
            # select, don't multiply, so OOB garbage / NaNs cannot leak in.
            valid = (chunk_base + row_iota) < rows
            w = jnp.where(valid, w, 0.0)
            m = jnp.where(valid, m, 0.0)
        return w, m

    n_chunks = tile_rows // acc_rows
    if n_chunks == 1:
        # Whole problem (or tile) fits in one chunk.
        acc_sq, acc_m = chunk_sums(block_base, pred_ref[...], tgt_ref[...],
                                   mask_ref[...])
    else:
        # Walk the tile in (8, lane_w) slices; accumulators stay in vregs,
        # no full-tile f32 intermediates are materialized in VMEM.
        def body(c, carry):
            a_sq, a_m = carry
            r0 = pl.multiple_of(c * acc_rows, acc_rows)
            w, m = chunk_sums(block_base + c * acc_rows,
                              pred_ref[pl.ds(r0, acc_rows), :],
                              tgt_ref[pl.ds(r0, acc_rows), :],
                              mask_ref[pl.ds(r0, acc_rows), :])
            return a_sq + w, a_m + m

        zeros = jnp.zeros((acc_rows, lane_w), jnp.float32)
        acc_sq, acc_m = lax.fori_loop(0, n_chunks, body, (zeros, zeros),
                                      unroll=min(8, n_chunks))

    sq_out_ref[...] += acc_sq.reshape(1, acc_rows, lane_w)
    m_out_ref[...] += acc_m.reshape(1, acc_rows, lane_w)


def _masked_mse_sums(pred2d, tgt2d, mask2d, *, rows, lane_w, tile_rows,
                     num_splits):
    """Returns (sum(mask * (p - t)^2), sum(mask)) as f32 scalars."""
    tiles_total = pl.cdiv(rows, tile_rows)
    tiles_per_split = pl.cdiv(tiles_total, num_splits)
    covered_rows = num_splits * tiles_per_split * tile_rows
    needs_row_mask = covered_rows != rows
    acc_rows = SUBLANES if tile_rows % SUBLANES == 0 else tile_rows
    last_block = tiles_total - 1

    kernel = functools.partial(
        _masked_mse_kernel, rows=rows, tile_rows=tile_rows, acc_rows=acc_rows,
        lane_w=lane_w, tiles_per_split=tiles_per_split,
        needs_row_mask=needs_row_mask)

    # Clamp fully out-of-range block indices (possible on the last split when
    # tiles_total % num_splits != 0); their contribution is masked to zero.
    in_blk = pl.BlockSpec(
        (tile_rows, lane_w),
        lambda s, j: (jnp.minimum(s * tiles_per_split + j, last_block), 0))
    out_blk = pl.BlockSpec((1, acc_rows, lane_w), lambda s, j: (s, 0, 0))

    if num_splits > 1:
        sem = (pltpu.CORE_PARALLEL, pltpu.ARBITRARY)   # real 2-TC sharding (v7x)
    else:
        sem = (pltpu.ARBITRARY, pltpu.ARBITRARY)

    sq_parts, m_parts = pl.pallas_call(
        kernel,
        out_shape=(
            jax.ShapeDtypeStruct((num_splits, acc_rows, lane_w), jnp.float32),
            jax.ShapeDtypeStruct((num_splits, acc_rows, lane_w), jnp.float32),
        ),
        grid_spec=pltpu.PrefetchScalarGridSpec(
            num_scalar_prefetch=0,
            grid=(num_splits, tiles_per_split),
            in_specs=(in_blk, in_blk, in_blk),
            out_specs=(out_blk, out_blk),
        ),
        compiler_params=pltpu.CompilerParams(
            dimension_semantics=sem,
            vmem_limit_bytes=32 * 1024 * 1024,
        ),
    )(pred2d, tgt2d, mask2d)

    # Tiny final cross-lane combine on the per-core partials.
    return jnp.sum(sq_parts), jnp.sum(m_parts)


def masked_mse_loss_pallas(prediction, target, mask):
    """MSELoss(reduction='batch-based').forward(prediction, target, mask)."""
    prediction = jnp.asarray(prediction)
    target = jnp.asarray(target)
    mask = jnp.asarray(mask)
    assert prediction.shape == target.shape == mask.shape
    n = int(prediction.size)
    if n == 0:
        return jnp.float32(0.0)

    # Lane-dense flat view with NO padding copy: row-major reshapes of
    # contiguous arrays are bitcasts (zero extra HBM traffic).
    last = int(prediction.shape[-1]) if prediction.ndim else 1
    lane_w = LANES if n % LANES == 0 else last
    rows = n // lane_w

    padded_lane = _round_up(lane_w, LANES)
    budget_rows = max(ROW_ALIGN, TARGET_BLOCK_BYTES // (padded_lane * 4))
    if rows <= budget_rows:
        tile_rows = rows                                   # single full block
    else:
        tile_rows = (budget_rows // ROW_ALIGN) * ROW_ALIGN  # 2048 for lane=128

    pred2d = prediction.reshape(rows, lane_w)
    tgt2d = target.reshape(rows, lane_w)
    mask2d = mask.reshape(rows, lane_w)

    tiles_total = pl.cdiv(rows, tile_rows)
    num_splits = min(_num_tensorcores(), tiles_total)

    try:
        sum_sq, sum_m = _masked_mse_sums(
            pred2d, tgt2d, mask2d, rows=rows, lane_w=lane_w,
            tile_rows=tile_rows, num_splits=num_splits)
    except Exception:
        if num_splits == 1:
            raise
        # Fall back to the single-core path if CORE_PARALLEL is unsupported.
        sum_sq, sum_m = _masked_mse_sums(
            pred2d, tgt2d, mask2d, rows=rows, lane_w=lane_w,
            tile_rows=tile_rows, num_splits=1)

    # Batch-based reduction: sum(image_loss) / sum(2*M), 0 if the divisor is 0.
    divisor = 2.0 * sum_m
    safe = jnp.where(divisor == 0.0, jnp.float32(1.0), divisor)
    loss = jnp.where(divisor == 0.0, jnp.float32(0.0), sum_sq / safe)
    # TODO(synk): the 'image-based' reduction path (per-image normalization via
    # nonzero indexing) is not implemented; only the default 'batch-based'
    # reduction is.
    return loss


if __name__ == "__main__":
    key = jax.random.PRNGKey(0)
    k1, k2, k3 = jax.random.split(key, 3)

    # Primary test: shapes consistent with the module (B, H, W).
    B, H, W = 2, 16, 16
    prediction = jax.random.normal(k1, (B, H, W), dtype=jnp.float32)
    target = jax.random.normal(k2, (B, H, W), dtype=jnp.float32)
    mask = (jax.random.uniform(k3, (B, H, W)) > 0.3).astype(jnp.float32)

    loss = jax.block_until_ready(masked_mse_loss_pallas(prediction, target, mask))

    res = prediction - target
    image_loss = jnp.sum(mask * res * res, axis=(1, 2))
    M = jnp.sum(mask, axis=(1, 2))
    divisor = jnp.sum(2.0 * M)
    ref = jnp.where(divisor == 0.0, jnp.float32(0.0),
                    jnp.sum(image_loss) / divisor)
    assert jnp.allclose(loss, ref, rtol=1e-5, atol=1e-6), (loss, ref)

    # Zero-mask divisor guard.
    loss0 = jax.block_until_ready(
        masked_mse_loss_pallas(prediction, target, jnp.zeros_like(mask)))
    assert jnp.allclose(loss0, 0.0), loss0

    # Exercise the multi-tile + ragged-tail + chunked-loop path at a tiny size
    # (explicit small tile_rows so grid has a partial final block).
    p2 = jax.random.normal(k1, (2, 48, 32), dtype=jnp.float32)
    t2 = jax.random.normal(k2, (2, 48, 32), dtype=jnp.float32)
    m2 = (jax.random.uniform(k3, (2, 48, 32)) > 0.5).astype(jnp.float32)
    ssq, sm = _masked_mse_sums(p2.reshape(24, 128), t2.reshape(24, 128),
                               m2.reshape(24, 128), rows=24, lane_w=128,
                               tile_rows=16, num_splits=1)
    ssq, sm = jax.block_until_ready((ssq, sm))
    ref_ssq = jnp.sum(m2 * (p2 - t2) ** 2)
    ref_sm = jnp.sum(m2)
    assert jnp.allclose(ssq, ref_ssq, rtol=1e-5, atol=1e-5), (ssq, ref_ssq)
    assert jnp.allclose(sm, ref_sm, rtol=1e-5, atol=1e-5), (sm, ref_sm)

    print("KERNEL_OK")
</pallas_src>

<mosaic_0001>
module attributes {stable_mosaic.version = 11 : i64} {
  func.func @_masked_mse_kernel(%arg0: i32, %arg1: i32, %arg2: memref<4x128xf32, #tpu.memory_space<vmem>>, %arg3: memref<4x128xf32, #tpu.memory_space<vmem>>, %arg4: memref<4x128xf32, #tpu.memory_space<vmem>>, %arg5: memref<1x4x128xf32, #tpu.memory_space<vmem>>, %arg6: memref<1x4x128xf32, #tpu.memory_space<vmem>>) attributes {dimension_semantics = [#tpu.dimension_semantics<arbitrary>, #tpu.dimension_semantics<arbitrary>], iteration_bounds = array<i64: 1, 1>, scalar_prefetch = 0 : i64, scratch_operands = 0 : i64, tpu.core_type = #tpu.core_type<tc>, window_params = [{transform_indices = @transform_0, window_bounds = array<i64: 4, 128>}, {transform_indices = @transform_1, window_bounds = array<i64: 4, 128>}, {transform_indices = @transform_2, window_bounds = array<i64: 4, 128>}, {transform_indices = @transform_3, window_bounds = array<i64: 1, 4, 128>}, {transform_indices = @transform_4, window_bounds = array<i64: 1, 4, 128>}]} {
    %c0_i32 = arith.constant 0 : i32
    %0 = arith.cmpi eq, %arg1, %c0_i32 : i32
    %1 = arith.extui %0 : i1 to i32
    %c0_i32_0 = arith.constant 0 : i32
    %2 = arith.cmpi ne, %1, %c0_i32_0 : i32
    scf.if %2 {
      %cst = arith.constant 0.000000e+00 : f32
      %17 = vector.broadcast %cst : f32 to vector<1x4x128xf32>
      %c0_18 = arith.constant 0 : index
      %c0_19 = arith.constant 0 : index
      %c0_20 = arith.constant 0 : index
      %18 = vector.load %arg5[%c0_18, %c0_19, %c0_20] : memref<1x4x128xf32, #tpu.memory_space<vmem>>, vector<1x4x128xf32>
      tpu.vector_store %arg5[%c0_18, %c0_19, %c0_20], %17 {strides = array<i32>} : memref<1x4x128xf32, #tpu.memory_space<vmem>>, vector<1x4x128xf32>,
      %cst_21 = arith.constant 0.000000e+00 : f32
      %19 = vector.broadcast %cst_21 : f32 to vector<1x4x128xf32>
      %c0_22 = arith.constant 0 : index
      %c0_23 = arith.constant 0 : index
      %c0_24 = arith.constant 0 : index
      %20 = vector.load %arg6[%c0_22, %c0_23, %c0_24] : memref<1x4x128xf32, #tpu.memory_space<vmem>>, vector<1x4x128xf32>
      tpu.vector_store %arg6[%c0_22, %c0_23, %c0_24], %19 {strides = array<i32>} : memref<1x4x128xf32, #tpu.memory_space<vmem>>, vector<1x4x128xf32>,
    } else {
    }
    %c0 = arith.constant 0 : index
    %c0_1 = arith.constant 0 : index
    %3 = vector.load %arg2[%c0, %c0_1] : memref<4x128xf32, #tpu.memory_space<vmem>>, vector<4x128xf32>
    %c0_2 = arith.constant 0 : index
    %c0_3 = arith.constant 0 : index
    %4 = vector.load %arg3[%c0_2, %c0_3] : memref<4x128xf32, #tpu.memory_space<vmem>>, vector<4x128xf32>
    %c0_4 = arith.constant 0 : index
    %c0_5 = arith.constant 0 : index
    %5 = vector.load %arg4[%c0_4, %c0_5] : memref<4x128xf32, #tpu.memory_space<vmem>>, vector<4x128xf32>
    %6 = arith.subf %3, %4 : vector<4x128xf32>
    %7 = arith.mulf %5, %6 : vector<4x128xf32>
    %8 = arith.mulf %7, %6 : vector<4x128xf32>
    %c0_6 = arith.constant 0 : index
    %c0_7 = arith.constant 0 : index
    %c0_8 = arith.constant 0 : index
    %9 = vector.load %arg5[%c0_6, %c0_7, %c0_8] : memref<1x4x128xf32, #tpu.memory_space<vmem>>, vector<1x4x128xf32>
    %10 = vector.shape_cast %8 : vector<4x128xf32> to vector<1x4x128xf32>
    %11 = arith.addf %9, %10 : vector<1x4x128xf32>
    %c0_9 = arith.constant 0 : index
    %c0_10 = arith.constant 0 : index
    %c0_11 = arith.constant 0 : index
    %12 = vector.load %arg5[%c0_9, %c0_10, %c0_11] : memref<1x4x128xf32, #tpu.memory_space<vmem>>, vector<1x4x128xf32>
    tpu.vector_store %arg5[%c0_9, %c0_10, %c0_11], %11 {strides = array<i32>} : memref<1x4x128xf32, #tpu.memory_space<vmem>>, vector<1x4x128xf32>,
    %c0_12 = arith.constant 0 : index
    %c0_13 = arith.constant 0 : index
    %c0_14 = arith.constant 0 : index
    %13 = vector.load %arg6[%c0_12, %c0_13, %c0_14] : memref<1x4x128xf32, #tpu.memory_space<vmem>>, vector<1x4x128xf32>
    %14 = vector.shape_cast %5 : vector<4x128xf32> to vector<1x4x128xf32>
    %15 = arith.addf %13, %14 : vector<1x4x128xf32>
    %c0_15 = arith.constant 0 : index
    %c0_16 = arith.constant 0 : index
    %c0_17 = arith.constant 0 : index
    %16 = vector.load %arg6[%c0_15, %c0_16, %c0_17] : memref<1x4x128xf32, #tpu.memory_space<vmem>>, vector<1x4x128xf32>
    tpu.vector_store %arg6[%c0_15, %c0_16, %c0_17], %15 {strides = array<i32>} : memref<1x4x128xf32, #tpu.memory_space<vmem>>, vector<1x4x128xf32>,
    return
  }
  func.func @transform_0(%arg0: i32, %arg1: i32) -> (i32, i32) {
    %c1_i32 = arith.constant 1 : i32
    %0 = arith.muli %arg0, %c1_i32 : i32
    %1 = arith.addi %0, %arg1 : i32
    %c0_i32 = arith.constant 0 : i32
    %2 = arith.minsi %1, %c0_i32 : i32
    %c0_i32_0 = arith.constant 0 : i32
    %c0_i32_1 = arith.constant 0 : i32
    return %2, %c0_i32_0 : i32, i32
  }
  func.func @transform_1(%arg0: i32, %arg1: i32) -> (i32, i32) {
    %c1_i32 = arith.constant 1 : i32
    %0 = arith.muli %arg0, %c1_i32 : i32
    %1 = arith.addi %0, %arg1 : i32
    %c0_i32 = arith.constant 0 : i32
    %2 = arith.minsi %1, %c0_i32 : i32
    %c0_i32_0 = arith.constant 0 : i32
    %c0_i32_1 = arith.constant 0 : i32
    return %2, %c0_i32_0 : i32, i32
  }
  func.func @transform_2(%arg0: i32, %arg1: i32) -> (i32, i32) {
    %c1_i32 = arith.constant 1 : i32
    %0 = arith.muli %arg0, %c1_i32 : i32
    %1 = arith.addi %0, %arg1 : i32
    %c0_i32 = arith.constant 0 : i32
    %2 = arith.minsi %1, %c0_i32 : i32
    %c0_i32_0 = arith.constant 0 : i32
    %c0_i32_1 = arith.constant 0 : i32
    return %2, %c0_i32_0 : i32, i32
  }
  func.func @transform_3(%arg0: i32, %arg1: i32) -> (i32, i32, i32) {
    %c0_i32 = arith.constant 0 : i32
    %c0_i32_0 = arith.constant 0 : i32
    %c0_i32_1 = arith.constant 0 : i32
    return %arg0, %c0_i32, %c0_i32_0 : i32, i32, i32
  }
  func.func @transform_4(%arg0: i32, %arg1: i32) -> (i32, i32, i32) {
    %c0_i32 = arith.constant 0 : i32
    %c0_i32_0 = arith.constant 0 : i32
    %c0_i32_1 = arith.constant 0 : i32
    return %arg0, %c0_i32, %c0_i32_0 : i32, i32, i32
  }
}

</mosaic_0001>

<bundles_post_ra>
// kernel: tpu_custom_call.1
= control target key start
LH: loop header
LB: loop body
LE: loop exit
PB: predicated region body
PF: predicated region fallthrough
CT: control target
= control target key end

     0   :  { %10 = vsyncpa [#allocation3], 0  ;;  %s325_s0 = inlined_call_operand.hbm [shape: f32[4,128], index: 0, kind: input, shape index: {}]   ;;  %s326_s1 = inlined_call_operand.hbm [shape: f32[4,128], index: 1, kind: input, shape index: {}]   ;;  %s327_s2 = inlined_call_operand.vmem [shape: f32[4,128], index: 2, kind: input, shape index: {}]   ;;  %s328_s3 = inlined_call_operand.hbm [shape: f32[1,4,128], index: 3, kind: output, shape index: {0}]   ;;  %s329_s4 = inlined_call_operand.hbm [shape: f32[1,4,128], index: 4, kind: output, shape index: {1}]  }
   0x1   :  { %11 = vsyncpa [#allocation6], 0 }
   0x2   :  { %12 = vsyncpa [#allocation4], 0 }
   0x3   :  { %13 = vsyncpa [#allocation9], 0  ;;  %s244_s15 = smov [#allocation2]   ;;  %s245_s17 = smov [#allocation5]  }
   0x4   :  { %s25_s16 = sshll.u32 %s244_s15, 4  ;;  %s40_s18 = sshll.u32 %s245_s17, 4  ;;  %s26_s16 = int_to_ptr.vmem [resolvable:$true] %s25_s16  ;;  %s41_s18 = int_to_ptr.vmem [resolvable:$true] %s40_s18 }
   0x5   :  { %s148_s21 = scalar_lea.hbm %s325_s0, 64 }
   0x6   :  { %p149_p0 = scmp.ne.s32.totalorder %s325_s0, %s148_s21  ;;  %p152_p1 = scmp.lt.u32.totalorder %s148_s21, %s325_s0 }
   0x8   :  { %p154_p2 = pnand %p152_p1, %p149_p0 }
   0xa   :  { %157 = shalt.err (!%p154_p2)
}
   0xb   :  { %s158_s26 = scalar_lea.vmem %s26_s16, 64  ;;  %p163_p4 = scmp.lt.s32.totalorder %s26_s16, %s26_s16 }
   0xc   :  { %p159_p3 = scmp.ne.s32.totalorder %s26_s16, %s158_s26  ;;  %p164_p5 = scmp.lt.s32.totalorder %s158_s26, %s158_s26 }
   0xe   :  { %p165_p6 = por %p164_p5, %p163_p4 }
  0x10   :  { %p166_p7 = pnand %p165_p6, %p159_p3 }
  0x12   :  { %169 = shalt.err (!%p166_p7)
}
  0x13   :  { %28 = dma.hbm_to_vmem [thread:$0]  %s325_s0, 64, %s26_s16, [#allocation3]  }
  0x14   :  { %s170_s5 = scalar_lea.hbm %s326_s1, 64 }
  0x15   :  { %p171_p8 = scmp.ne.s32.totalorder %s326_s1, %s170_s5  ;;  %p174_p9 = scmp.lt.u32.totalorder %s170_s5, %s326_s1 }
  0x17   :  { %p176_p10 = pnand %p174_p9, %p171_p8 }
  0x19   :  { %179 = shalt.err (!%p176_p10)
}
  0x1a   :  { %s180_s10 = scalar_lea.vmem %s41_s18, 64  ;;  %p185_p12 = scmp.lt.s32.totalorder %s41_s18, %s41_s18 }
  0x1b   :  { %p181_p11 = scmp.ne.s32.totalorder %s41_s18, %s180_s10  ;;  %p186_p13 = scmp.lt.s32.totalorder %s180_s10, %s180_s10 }
  0x1d   :  { %p187_p0 = por %p186_p13, %p185_p12 }
  0x1f   :  { %p188_p1 = pnand %p187_p0, %p181_p11 }
  0x21   :  { %191 = shalt.err (!%p188_p1)
}
  0x22   :  { %43 = dma.hbm_to_vmem [thread:$0]  %s326_s1, 64, %s41_s18, [#allocation6]  }
  0x23   :  { %236 = dma.done.wait [#allocation3], 64  }
  0x24   :  { %237 = vsyncadd [#allocation3], 4294967232 }
  0x25   :  { %238 = dma.done.wait [#allocation6], 64  }
  0x26   :  { %239 = vsyncadd [#allocation6], 4294967232  ;;  %v246_v0 = vmov 0.0   ;;  %s247_s12 = smov [#allocation8]   ;;  %v91_v1 = vld [vmem:[#allocation2] sm:$0xf] }
  0x27   :  { %89 = vst [vmem:[#allocation7] sm:$0xf] %v246_v0  ;;  %90 = vst [vmem:[#allocation8] sm:$0xf] %v246_v0  ;;  %s119_s13 = sshll.u32 %s247_s12, 4  ;;  %s248_s1 = smov [#allocation7]   ;;  %s120_s13 = int_to_ptr.vmem [resolvable:$true] %s119_s13 }
  0x28   :  { %v92_v2 = vld [vmem:[#allocation5] sm:$0xf]  ;;  %v93_v3 = vld [vmem:[%s327_s2] sm:$0xf]  ;;  %s109_s16 = sshll.u32 %s248_s1, 4  ;;  %s192_s17 = scalar_lea.vmem %s120_s13, 64  ;;  %s110_s16 = int_to_ptr.vmem [resolvable:$true] %s109_s16 }
  0x29   :  { %v94_v4 = vsub.f32 %v91_v1, %v92_v2  ;;  %p193_p2 = scmp.ne.s32.totalorder %s120_s13, %s192_s17  ;;  %p197_p3 = scmp.lt.s32.totalorder %s120_s13, %s120_s13 }
  0x2a   :  { %p198_p4 = scmp.lt.s32.totalorder %s192_s17, %s192_s17 }
  0x2b   :  { %v95_v7 = vmul.f32 %v94_v4, %v93_v3 }
  0x2c   :  { %p199_p5 = por %p198_p4, %p197_p3 }
  0x2d   :  { %v96_v9 = vmul.f32 %v95_v7, %v94_v4 }
  0x2e   :  { %v100_v5 = vld [vmem:[#allocation8] sm:$0xf]  ;;  %v97_v8 = vld [vmem:[#allocation7] sm:$0xf]  ;;  %p200_p6 = pnand %p199_p5, %p193_p2 }
  0x2f   :  { %v101_v6 = vadd.f32 %v100_v5, %v93_v3 }
  0x31   :  { %102 = vst [vmem:[#allocation8] sm:$0xf] %v101_v6 }
  0x32   :  { %203 = shalt.err (!%p200_p6)
}
  0x33   :  { %s204_s2 = scalar_lea.hbm %s329_s4, 64 }
  0x34   :  { %p205_p7 = scmp.ne.s32.totalorder %s329_s4, %s204_s2  ;;  %p208_p8 = scmp.lt.u32.totalorder %s204_s2, %s329_s4 }
  0x36   :  { %p210_p9 = pnand %p208_p8, %p205_p7 }
  0x38   :  { %213 = shalt.err (!%p210_p9)
}
  0x39   :  { %122 = dma.vmem_to_hbm [thread:$0]  %s120_s13, 64, %s329_s4, [#allocation9]   ;;  %v98_v10 = vadd.f32 %v97_v8, %v96_v9 }
  0x3a   :  { %s214_s26 = scalar_lea.vmem %s110_s16, 64  ;;  %p219_p11 = scmp.lt.s32.totalorder %s110_s16, %s110_s16 }
  0x3b   :  { %99 = vst [vmem:[#allocation7] sm:$0xf] %v98_v10  ;;  %p215_p10 = scmp.ne.s32.totalorder %s110_s16, %s214_s26  ;;  %p220_p12 = scmp.lt.s32.totalorder %s214_s26, %s214_s26 }
  0x3d   :  { %p221_p13 = por %p220_p12, %p219_p11 }
  0x3f   :  { %p222_p0 = pnand %p221_p13, %p215_p10 }
  0x41   :  { %225 = shalt.err (!%p222_p0)
}
  0x42   :  { %s226_s29 = scalar_lea.hbm %s328_s3, 64 }
  0x43   :  { %p227_p1 = scmp.ne.s32.totalorder %s328_s3, %s226_s29  ;;  %p230_p2 = scmp.lt.u32.totalorder %s226_s29, %s328_s3 }
  0x45   :  { %p232_p3 = pnand %p230_p2, %p227_p1 }
  0x47   :  { %235 = shalt.err (!%p232_p3)
}
  0x48   :  { %112 = dma.vmem_to_hbm [thread:$0]  %s110_s16, 64, %s328_s3, [#allocation4]  }
  0x49   :  { %240 = dma.done.wait [#allocation4], 64  }
  0x4a   :  { %241 = vsyncadd [#allocation4], 4294967232 }
  0x4b   :  { %242 = dma.done.wait [#allocation9], 64  }
  0x4c   :  { %243 = vsyncadd [#allocation9], 4294967232 }
  0x4d   :  { %129 = vsyncpa [#allocation3], 1 }
  0x4e   :  { %130 = vsyncpa [#allocation6], 1 }
  0x4f   :  { %131 = vsyncpa [#allocation4], 1 }
  0x50   :  { %132 = vsyncpa [#allocation9], 1 }

</bundles_post_ra>
